<compile_context>
chip_gen: v5e
topology: v5e:2x2
jax: 0.10.0
libtpu: 0.0.40
codegen_flags: <defaults>
</compile_context>

<pallas_src>
import functools

import jax
import jax.numpy as jnp
from jax.experimental import pallas as pl
from jax.experimental.pallas import tpu as pltpu


def _round_up(x, m):
    return ((x + m - 1) // m) * m


def mlp_kernel(x_ref, w1t_ref, b1_ref, w2t_ref, b2_ref, o_ref, acc_ref):
    """One (batch-tile i, hidden-tile k) grid step of fc1 -> ReLU -> fc2.

    x_ref   : [TB, Ip]   batch tile (block index constant across k -> no re-DMA)
    w1t_ref : [Ip, TH]   fc1 weight slice (pre-transposed)
    b1_ref  : [1,  TH]   fc1 bias slice
    w2t_ref : [TH, Op]   fc2 weight slice (pre-transposed)
    b2_ref  : [1,  Op]   fc2 bias
    acc_ref : [TB, Op]   f32 accumulator over hidden tiles
    """
    k = pl.program_id(1)

    @pl.when(k == 0)
    def _init():
        # Fold the fc2 bias into the accumulator init -> nothing to add later.
        acc_ref[...] = jnp.broadcast_to(b2_ref[...], acc_ref.shape)

    # fc1 for this hidden slice, bias + ReLU (zero-padded lanes stay exactly 0,
    # so padded hidden columns contribute exactly 0 to the fc2 accumulation).
    h = jnp.dot(x_ref[...], w1t_ref[...], preferred_element_type=jnp.float32)
    h = jnp.maximum(h + b1_ref[...], 0.0)
    # Partial fc2 contribution from this hidden slice.
    acc_ref[...] += jnp.dot(h, w2t_ref[...], preferred_element_type=jnp.float32)

    @pl.when(k == pl.num_programs(1) - 1)
    def _finalize():
        o_ref[...] = acc_ref[...].astype(o_ref.dtype)


def prepare_params(w1, b1, w2, b2, *, hidden_tile=512):
    """One-time weight prep (pad + transpose) so the hot path never touches it.

    w1: [H, I], b1: [H], w2: [O, H], b2: [O]  (PyTorch nn.Linear layout)
    Returns padded, pre-transposed params plus (out_features, hidden_tile).
    """
    H, I = w1.shape
    O = w2.shape[0]

    Ip = _round_up(I, 128)
    Hp = _round_up(H, 128)
    TH = min(hidden_tile, Hp)
    Hp = _round_up(Hp, TH)          # make the hidden tile divide Hp exactly
    Op = _round_up(O, 128)          # lane-dense output tile (>=128 lanes)

    w1t_p = jnp.zeros((Ip, Hp), jnp.float32).at[:I, :H].set(w1.T)
    b1_p = jnp.zeros((1, Hp), jnp.float32).at[0, :H].set(b1)
    w2t_p = jnp.zeros((Hp, Op), jnp.float32).at[:H, :O].set(w2.T)
    b2_p = jnp.zeros((1, Op), jnp.float32).at[0, :O].set(b2)
    return w1t_p, b1_p, w2t_p, b2_p, O, TH


@functools.partial(
    jax.jit, static_argnames=("out_features", "hidden_tile", "batch_tile"))
def mlp_forward(x, w1t_p, b1_p, w2t_p, b2_p, *, out_features, hidden_tile,
                batch_tile=256):
    """x: [B, in_features] float32 -> [B, out_features] float32."""
    B, I = x.shape
    Ip, Hp = w1t_p.shape
    Op = w2t_p.shape[1]
    TH = hidden_tile

    # Batch tile: 256 rows (good MXU M-occupancy on v6e/v7x); shrink for tiny B
    # but keep the sublane multiple of 8.
    TB = min(batch_tile, _round_up(B, 8))
    Bp = _round_up(B, TB)

    # Only x is padded per call (weights were padded once at load time).
    if (Bp, Ip) != (B, I):
        x_p = jnp.zeros((Bp, Ip), jnp.float32).at[:B, :I].set(x)
    else:
        x_p = x

    grid = (Bp // TB, Hp // TH)

    flops = 2 * Bp * (Ip * Hp + Hp * Op)
    bytes_accessed = 4 * (Bp * Ip + Ip * Hp + Hp * Op + Bp * Op + Hp + Op)

    out_p = pl.pallas_call(
        mlp_kernel,
        out_shape=jax.ShapeDtypeStruct((Bp, Op), jnp.float32),
        grid_spec=pltpu.PrefetchScalarGridSpec(
            num_scalar_prefetch=0,
            grid=grid,
            in_specs=[
                pl.BlockSpec((TB, Ip), lambda i, k: (i, 0)),   # x tile
                pl.BlockSpec((Ip, TH), lambda i, k: (0, k)),   # W1^T slice
                pl.BlockSpec((1, TH), lambda i, k: (0, k)),    # b1 slice
                pl.BlockSpec((TH, Op), lambda i, k: (k, 0)),   # W2^T slice
                pl.BlockSpec((1, Op), lambda i, k: (0, 0)),    # b2
            ],
            out_specs=pl.BlockSpec((TB, Op), lambda i, k: (i, 0)),
            scratch_shapes=[pltpu.VMEM((TB, Op), jnp.float32)],
        ),
        compiler_params=pltpu.CompilerParams(
            # Batch tiles are independent -> megacore-parallel on v7x;
            # hidden axis is a reduction -> arbitrary.
            dimension_semantics=("parallel", "arbitrary"),
            # Above the 16/32 MiB scoped defaults, under v7x's 64 MiB physical
            # VMEM with headroom.
            vmem_limit_bytes=48 * 1024 * 1024,
        ),
        cost_estimate=pl.CostEstimate(
            flops=flops, transcendentals=0, bytes_accessed=bytes_accessed),
    )(x_p, w1t_p, b1_p, w2t_p, b2_p)

    return out_p[:B, :out_features]


def reference_forward(x, w1, b1, w2, b2):
    h = jnp.maximum(x @ w1.T + b1, 0.0)
    return h @ w2.T + b2


if __name__ == "__main__":
    input_size, hidden_size, output_size = 5, 10, 3
    batch = 8

    key = jax.random.PRNGKey(0)
    k_x, k_w1, k_b1, k_w2, k_b2 = jax.random.split(key, 5)

    # Deterministic synthetic parameters matching the PyTorch module shapes:
    # fc1.weight [10,5], fc1.bias [10], fc2.weight [3,10], fc2.bias [3], * 0.1.
    w1 = jax.random.normal(k_w1, (hidden_size, input_size), jnp.float32) * 0.1
    b1 = jax.random.normal(k_b1, (hidden_size,), jnp.float32) * 0.1
    w2 = jax.random.normal(k_w2, (output_size, hidden_size), jnp.float32) * 0.1
    b2 = jax.random.normal(k_b2, (output_size,), jnp.float32) * 0.1

    x = jax.random.normal(k_x, (batch, input_size), jnp.float32)

    # One-time weight prep (outside the per-call hot path).
    w1t_p, b1_p, w2t_p, b2_p, out_feats, hidden_tile = prepare_params(
        w1, b1, w2, b2)

    out = mlp_forward(x, w1t_p, b1_p, w2t_p, b2_p,
                      out_features=out_feats, hidden_tile=hidden_tile)
    out = jax.block_until_ready(out)

    ref = reference_forward(x, w1, b1, w2, b2)
    assert out.shape == (batch, output_size), out.shape
    assert jnp.allclose(out, ref, atol=1e-5, rtol=1e-5), "mismatch vs reference"

    print("KERNEL_OK")
</pallas_src>

<mosaic_0001>
module attributes {stable_mosaic.version = 11 : i64} {
  func.func @mlp_kernel(%arg0: i32, %arg1: i32, %arg2: memref<8x128xf32, #tpu.memory_space<vmem>>, %arg3: memref<128x128xf32, #tpu.memory_space<vmem>>, %arg4: memref<1x128xf32, #tpu.memory_space<vmem>>, %arg5: memref<128x128xf32, #tpu.memory_space<vmem>>, %arg6: memref<1x128xf32, #tpu.memory_space<vmem>>, %arg7: memref<8x128xf32, #tpu.memory_space<vmem>>, %arg8: memref<8x128xf32, #tpu.memory_space<vmem>>) attributes {dimension_semantics = [#tpu.dimension_semantics<parallel>, #tpu.dimension_semantics<arbitrary>], iteration_bounds = array<i64: 1, 1>, scalar_prefetch = 0 : i64, scratch_operands = 1 : i64, tpu.core_type = #tpu.core_type<tc>, window_params = [{transform_indices = @transform_0, window_bounds = array<i64: 8, 128>}, {transform_indices = @transform_1, window_bounds = array<i64: 128, 128>}, {transform_indices = @transform_2, window_bounds = array<i64: 1, 128>}, {transform_indices = @transform_3, window_bounds = array<i64: 128, 128>}, {pipeline_mode = #tpu.pipeline_mode<synchronous>, transform_indices = @transform_4, window_bounds = array<i64: 1, 128>}, {transform_indices = @transform_5, window_bounds = array<i64: 8, 128>}]} {
    %c0_i32 = arith.constant 0 : i32
    %0 = arith.cmpi eq, %arg1, %c0_i32 : i32
    %1 = arith.extui %0 : i1 to i32
    %c0_i32_0 = arith.constant 0 : i32
    %2 = arith.cmpi ne, %1, %c0_i32_0 : i32
    scf.if %2 {
      %c0_16 = arith.constant 0 : index
      %c0_17 = arith.constant 0 : index
      %19 = vector.load %arg6[%c0_16, %c0_17] : memref<1x128xf32, #tpu.memory_space<vmem>>, vector<1x128xf32>
      %20 = vector.shape_cast %19 : vector<1x128xf32> to vector<1x128xf32>
      %21 = vector.broadcast %20 : vector<1x128xf32> to vector<8x128xf32>
      %c0_18 = arith.constant 0 : index
      %c0_19 = arith.constant 0 : index
      %22 = vector.load %arg8[%c0_18, %c0_19] : memref<8x128xf32, #tpu.memory_space<vmem>>, vector<8x128xf32>
      tpu.vector_store %arg8[%c0_18, %c0_19], %21 {strides = array<i32>} : memref<8x128xf32, #tpu.memory_space<vmem>>, vector<8x128xf32>,
    } else {
    }
    %c0 = arith.constant 0 : index
    %c0_1 = arith.constant 0 : index
    %3 = vector.load %arg2[%c0, %c0_1] : memref<8x128xf32, #tpu.memory_space<vmem>>, vector<8x128xf32>
    %c0_2 = arith.constant 0 : index
    %c0_3 = arith.constant 0 : index
    %4 = vector.load %arg3[%c0_2, %c0_3] : memref<128x128xf32, #tpu.memory_space<vmem>>, vector<128x128xf32>
    %cst = arith.constant dense<0.000000e+00> : vector<8x128xf32>
    %5 = tpu.matmul %3, %4, %cst {dimension_numbers = #tpu.dot_dimension_numbers<[1], [0], [0], [1], [0, 0, 1, 1], [], []>} : vector<8x128xf32>, vector<128x128xf32>, vector<8x128xf32> -> vector<8x128xf32>
    %c0_4 = arith.constant 0 : index
    %c0_5 = arith.constant 0 : index
    %6 = vector.load %arg4[%c0_4, %c0_5] : memref<1x128xf32, #tpu.memory_space<vmem>>, vector<1x128xf32>
    %7 = vector.broadcast %6 : vector<1x128xf32> to vector<8x128xf32>
    %8 = arith.addf %5, %7 : vector<8x128xf32>
    %cst_6 = arith.constant 0.000000e+00 : f32
    %9 = vector.broadcast %cst_6 : f32 to vector<8x128xf32>
    %10 = arith.maximumf %8, %9 : vector<8x128xf32>
    %c0_7 = arith.constant 0 : index
    %c0_8 = arith.constant 0 : index
    %11 = vector.load %arg8[%c0_7, %c0_8] : memref<8x128xf32, #tpu.memory_space<vmem>>, vector<8x128xf32>
    %c0_9 = arith.constant 0 : index
    %c0_10 = arith.constant 0 : index
    %12 = vector.load %arg5[%c0_9, %c0_10] : memref<128x128xf32, #tpu.memory_space<vmem>>, vector<128x128xf32>
    %cst_11 = arith.constant dense<0.000000e+00> : vector<8x128xf32>
    %13 = tpu.matmul %10, %12, %cst_11 {dimension_numbers = #tpu.dot_dimension_numbers<[1], [0], [0], [1], [0, 0, 1, 1], [], []>} : vector<8x128xf32>, vector<128x128xf32>, vector<8x128xf32> -> vector<8x128xf32>
    %14 = arith.addf %11, %13 : vector<8x128xf32>
    %c0_12 = arith.constant 0 : index
    %c0_13 = arith.constant 0 : index
    %15 = vector.load %arg8[%c0_12, %c0_13] : memref<8x128xf32, #tpu.memory_space<vmem>>, vector<8x128xf32>
    tpu.vector_store %arg8[%c0_12, %c0_13], %14 {strides = array<i32>} : memref<8x128xf32, #tpu.memory_space<vmem>>, vector<8x128xf32>,
    %c0_i32_14 = arith.constant 0 : i32
    %16 = arith.cmpi eq, %arg1, %c0_i32_14 : i32
    %17 = arith.extui %16 : i1 to i32
    %c0_i32_15 = arith.constant 0 : i32
    %18 = arith.cmpi ne, %17, %c0_i32_15 : i32
    scf.if %18 {
      %c0_16 = arith.constant 0 : index
      %c0_17 = arith.constant 0 : index
      %19 = vector.load %arg8[%c0_16, %c0_17] : memref<8x128xf32, #tpu.memory_space<vmem>>, vector<8x128xf32>
      %c0_18 = arith.constant 0 : index
      %c0_19 = arith.constant 0 : index
      %20 = vector.load %arg7[%c0_18, %c0_19] : memref<8x128xf32, #tpu.memory_space<vmem>>, vector<8x128xf32>
      tpu.vector_store %arg7[%c0_18, %c0_19], %19 {strides = array<i32>} : memref<8x128xf32, #tpu.memory_space<vmem>>, vector<8x128xf32>,
    } else {
    }
    return
  }
  func.func @transform_0(%arg0: i32, %arg1: i32) -> (i32, i32) {
    %c0_i32 = arith.constant 0 : i32
    %c0_i32_0 = arith.constant 0 : i32
    return %arg0, %c0_i32 : i32, i32
  }
  func.func @transform_1(%arg0: i32, %arg1: i32) -> (i32, i32) {
    %c0_i32 = arith.constant 0 : i32
    %c0_i32_0 = arith.constant 0 : i32
    return %c0_i32, %arg1 : i32, i32
  }
  func.func @transform_2(%arg0: i32, %arg1: i32) -> (i32, i32) {
    %c0_i32 = arith.constant 0 : i32
    %c0_i32_0 = arith.constant 0 : i32
    return %c0_i32, %arg1 : i32, i32
  }
  func.func @transform_3(%arg0: i32, %arg1: i32) -> (i32, i32) {
    %c0_i32 = arith.constant 0 : i32
    %c0_i32_0 = arith.constant 0 : i32
    return %arg1, %c0_i32 : i32, i32
  }
  func.func @transform_4(%arg0: i32, %arg1: i32) -> (i32, i32) {
    %c0_i32 = arith.constant 0 : i32
    %c0_i32_0 = arith.constant 0 : i32
    %c0_i32_1 = arith.constant 0 : i32
    return %c0_i32, %c0_i32_0 : i32, i32
  }
  func.func @transform_5(%arg0: i32, %arg1: i32) -> (i32, i32) {
    %c0_i32 = arith.constant 0 : i32
    %c0_i32_0 = arith.constant 0 : i32
    return %arg0, %c0_i32 : i32, i32
  }
}

</mosaic_0001>

<bundles_post_ra>
// kernel: mlp_forward.1
= control target key start
LH: loop header
LB: loop body
LE: loop exit
PB: predicated region body
PF: predicated region fallthrough
CT: control target
= control target key end

     0   :  { %10 = vsyncpa [#allocation4], 0  ;;  %s263_s0 = inlined_call_operand.vmem [shape: f32[8,128], index: 0, kind: input, shape index: {}]   ;;  %s264_s1 = inlined_call_operand.hbm [shape: f32[128,128], index: 1, kind: input, shape index: {}]   ;;  %s265_s2 = inlined_call_operand.vmem [shape: f32[1,128], index: 2, kind: input, shape index: {}]   ;;  %s266_s3 = inlined_call_operand.hbm [shape: f32[128,128], index: 3, kind: input, shape index: {}]   ;;  %s267_s4 = inlined_call_operand.vmem [shape: f32[1,128], index: 4, kind: input, shape index: {}]   ;;  %s268_s5 = inlined_call_operand.vmem [shape: f32[8,128], index: 5, kind: output, shape index: {}]  }
   0x1   :  { %s18_s20 = sshll.u32 %s264_s1, 4  ;;  %s19_s20 = int_to_ptr.hbm [resolvable:$true] %s18_s20 }
   0x2   :  { %11 = vsyncpa [#allocation6], 0  ;;  %s211_s21 = smov [#allocation3]   ;;  %s33_s25 = sshll.u32 %s266_s3, 4  ;;  %s34_s25 = int_to_ptr.hbm [resolvable:$true] %s33_s25 }
   0x3   :  { %s20_s22 = sshll.u32 %s211_s21, 4  ;;  %s212_s26 = smov 128   ;;  %s21_s22 = int_to_ptr.vmem [resolvable:$true] %s20_s22 }
   0x4   :  { %s213_s27 = smov 8   ;;  %s214_s28 = smov [#allocation5]  }
   0x5   :  { %26 = dma.hbm_to_vmem [thread:$0]  %s19_s20, 2048, %s21_s22, [#allocation4], %s212_s26, %s212_s26, %s213_s27  }
   0x6   :  { %s35_s29 = sshll.u32 %s214_s28, 4  ;;  %s36_s29 = int_to_ptr.vmem [resolvable:$true] %s35_s29 }
   0x7   :  { %41 = dma.hbm_to_vmem [thread:$0]  %s34_s25, 2048, %s36_s29, [#allocation6], %s212_s26, %s212_s26, %s213_s27  }
   0x8   :  { %207 = dma.done.wait [#allocation4], 2048  }
   0x9   :  { %208 = vsyncadd [#allocation4], 4294965248 }
   0xa   :  { %209 = dma.done.wait [#allocation6], 2048  }
   0xb   :  { %210 = vsyncadd [#allocation6], 4294965248  ;;  %v77_v0 = vld [vmem:[#allocation3 + $0x78] sm:$0xff]  ;;  %v76_v1 = vld [vmem:[#allocation3 + $0x70] sm:$0xff] }
   0xc   :  { %82 = vmatpush.msra.mxu0 %v77_v0  ;;  %v75_v2 = vld [vmem:[#allocation3 + $0x68] sm:$0xff]  ;;  %v74_v3 = vld [vmem:[#allocation3 + $0x60] sm:$0xff]  ;;  %v119_v4 = vld [vmem:[#allocation5 + $0x78] sm:$0xff] }
   0xd   :  { %v73_v5 = vld [vmem:[#allocation3 + $0x58] sm:$0xff]  ;;  %120 = vmatpush.msra.mxu1 %v119_v4  ;;  %v118_v6 = vld [vmem:[#allocation5 + $0x70] sm:$0xff]  ;;  %v117_v7 = vld [vmem:[#allocation5 + $0x68] sm:$0xff] }
   0xe   :  { %83 = vmatpush.msra.mxu0 %v76_v1  ;;  %v72_v8 = vld [vmem:[#allocation3 + $0x50] sm:$0xff]  ;;  %v116_v9 = vld [vmem:[#allocation5 + $0x60] sm:$0xff]  ;;  %v71_v10 = vld [vmem:[#allocation3 + $0x48] sm:$0xff] }
   0xf   :  { %121 = vmatpush.msra.mxu1 %v118_v6  ;;  %v115_v11 = vld [vmem:[#allocation5 + $0x58] sm:$0xff]  ;;  %v70_v12 = vld [vmem:[#allocation3 + $0x40] sm:$0xff]  ;;  %v114_v13 = vld [vmem:[#allocation5 + $0x50] sm:$0xff] }
  0x10   :  { %84 = vmatpush.msra.mxu0 %v75_v2  ;;  %v69_v14 = vld [vmem:[#allocation3 + $0x38] sm:$0xff]  ;;  %v113_v15 = vld [vmem:[#allocation5 + $0x48] sm:$0xff]  ;;  %v68_v16 = vld [vmem:[#allocation3 + $0x30] sm:$0xff] }
  0x11   :  { %122 = vmatpush.msra.mxu1 %v117_v7  ;;  %v112_v17 = vld [vmem:[#allocation5 + $0x40] sm:$0xff]  ;;  %v67_v18 = vld [vmem:[#allocation3 + $0x28] sm:$0xff]  ;;  %v111_v19 = vld [vmem:[#allocation5 + $0x38] sm:$0xff] }
  0x12   :  { %85 = vmatpush.msra.mxu0 %v74_v3  ;;  %v66_v20 = vld [vmem:[#allocation3 + $0x20] sm:$0xff]  ;;  %v110_v21 = vld [vmem:[#allocation5 + $0x30] sm:$0xff]  ;;  %v65_v22 = vld [vmem:[#allocation3 + $0x18] sm:$0xff] }
  0x13   :  { %123 = vmatpush.msra.mxu1 %v116_v9  ;;  %v109_v23 = vld [vmem:[#allocation5 + $0x28] sm:$0xff]  ;;  %v64_v24 = vld [vmem:[#allocation3 + $0x10] sm:$0xff]  ;;  %v108_v25 = vld [vmem:[#allocation5 + $0x20] sm:$0xff] }
  0x14   :  { %86 = vmatpush.msra.mxu0 %v73_v5  ;;  %v63_v26 = vld [vmem:[#allocation3 + $0x8] sm:$0xff]  ;;  %v107_v27 = vld [vmem:[#allocation5 + $0x18] sm:$0xff]  ;;  %v62_v28 = vld [vmem:[#allocation3] sm:$0xff] }
  0x15   :  { %124 = vmatpush.msra.mxu1 %v115_v11  ;;  %v61_v29 = vld [vmem:[%s263_s0] sm:$0xff]  ;;  %v106_v30 = vld [vmem:[#allocation5 + $0x10] sm:$0xff]  ;;  %v105_v31 = vld [vmem:[#allocation5 + $0x8] sm:$0xff] }
  0x16   :  { %87 = vmatpush.msra.mxu0 %v72_v8  ;;  %v104_v32 = vld [vmem:[#allocation5] sm:$0xff] }
  0x17   :  { %125 = vmatpush.msra.mxu1 %v114_v13  ;;  %v157_v33 = vld [vmem:[%s265_s2] ss:$0 sm:$0xff] }
  0x18   :  { %88 = vmatpush.msra.mxu0 %v71_v10  ;;  %v158_v37 = vld [vmem:[%s267_s4] ss:$0 sm:$0xff] }
  0x19   :  { %126 = vmatpush.msra.mxu1 %v113_v15 }
  0x1a   :  { %89 = vmatpush.msra.mxu0 %v70_v12 }
  0x1b   :  { %127 = vmatpush.msra.mxu1 %v112_v17 }
  0x1c   :  { %90 = vmatpush.msra.mxu0 %v69_v14 }
  0x1d   :  { %128 = vmatpush.msra.mxu1 %v111_v19 }
  0x1e   :  { %91 = vmatpush.msra.mxu0 %v68_v16 }
  0x1f   :  { %129 = vmatpush.msra.mxu1 %v110_v21 }
  0x20   :  { %92 = vmatpush.msra.mxu0 %v67_v18 }
  0x21   :  { %130 = vmatpush.msra.mxu1 %v109_v23 }
  0x22   :  { %93 = vmatpush.msra.mxu0 %v66_v20 }
  0x23   :  { %131 = vmatpush.msra.mxu1 %v108_v25 }
  0x24   :  { %94 = vmatpush.msra.mxu0 %v65_v22 }
  0x25   :  { %132 = vmatpush.msra.mxu1 %v107_v27 }
  0x26   :  { %95 = vmatpush.msra.mxu0 %v64_v24 }
  0x27   :  { %133 = vmatpush.msra.mxu1 %v106_v30 }
  0x28   :  { %96 = vmatpush.msra.mxu0 %v63_v26 }
  0x29   :  { %134 = vmatpush.msra.mxu1 %v105_v31 }
  0x2a   :  { %97 = vmatpush.msra.mxu0 %v62_v28 }
  0x2b   :  { %98 = vmatmul.f32.vlgmr.msra.gmra.mxu0 %v61_v29  ;;  %135 = vmatpush.msra.mxu1 %v104_v32 }
  0xa8   :  { %v99_v34 = vpop.f32.mrf.mxu0 }
  0xa9   :  { %v100_v35 = vadd.f32 %v157_v33, %v99_v34 }
  0xab   :  { %v102_v36 = vmax.f32 %v100_v35, 0.0 }
  0xad   :  { %136 = vmatmul.f32.vlgmr.msra.gmra.mxu1 %v102_v36 }
 0x12a   :  { %v137_v38 = vpop.f32.mrf.mxu1 }
 0x12b   :  { %v140_v39 = vadd.f32 %v158_v37, %v137_v38 }
 0x12d   :  { %146 = vst [vmem:[%s268_s5] sm:$0xff] %v140_v39 }
 0x12e   :  { %151 = vsyncpa [#allocation4], 1 }
 0x12f   :  { %152 = vsyncpa [#allocation6], 1 }

</bundles_post_ra>
